<compile_context>
chip_gen: v7x
topology: tpu7x:2x2x1
jax: 0.10.0
libtpu: 0.0.40
codegen_flags: <defaults>
</compile_context>

<pallas_src>
import functools

import jax
import jax.numpy as jnp
from jax.experimental import pallas as pl
from jax.experimental.pallas import tpu as pltpu

IN_DIM = 4
OUT_DIM = 4
HIDDEN = 32
BATCH = 8


def coupling_kernel(x_ref, w1_ref, b1_ref, w2_ref, b2_ref,
                    y_ref, logdet_ref, *, in_dim, out_dim):
    """Fused affine-coupling forward on one feature-major [D, TB] batch tile.

    Batch rides the 128-lane axis (lane-dense loads/stores), features ride the
    sublane axis.  Two fused matmuls, one SiLU pass, static sublane-slice stores.
    """
    x = x_ref[...]                       # [in_dim + out_dim, TB]
    x1 = x[:in_dim, :]                   # [in_dim,  TB]
    x2 = x[in_dim:, :]                   # [out_dim, TB]

    # One fused matmul for both nets' first layers + a single SiLU pass.
    h = jnp.dot(w1_ref[...], x1, preferred_element_type=jnp.float32) + b1_ref[...]
    h = h * jax.nn.sigmoid(h)            # SiLU                         [2H, TB]

    # One fused (block-diagonal) matmul for both second layers -> [s_pre ; t].
    st = jnp.dot(w2_ref[...], h, preferred_element_type=jnp.float32) + b2_ref[...]
    s = jnp.tanh(st[:out_dim, :])        # scale branch             [out_dim, TB]
    t = st[out_dim:, :]                  # translate branch         [out_dim, TB]

    y2 = x2 * jnp.exp(s) + t

    # Static sublane-slice stores: lane-dense, x1 passes straight through.
    y_ref[:in_dim, :] = x1.astype(y_ref.dtype)
    y_ref[in_dim:, :] = y2.astype(y_ref.dtype)
    # log_det is lane-dense for free in this layout: [1, TB].
    logdet_ref[...] = jnp.sum(s, axis=0, keepdims=True).astype(logdet_ref.dtype)


def _fuse_params(params):
    """Fuse + transpose scale_net / translate_net weights for the feature-major kernel."""
    ws1, bs1, ws2, bs2, wt1, bt1, wt2, bt2 = params
    hidden = ws1.shape[1]
    out_dim = ws2.shape[1]
    # First layers fused along the hidden axis, stored transposed.
    w1t = jnp.concatenate([ws1, wt1], axis=1).T             # [2H, in_dim]
    b1t = jnp.concatenate([bs1, bt1], axis=1).T              # [2H, 1]
    # Second layers fused block-diagonally, stored transposed.
    w2t = jnp.zeros((2 * out_dim, 2 * hidden), ws2.dtype)
    w2t = w2t.at[:out_dim, :hidden].set(ws2.T)
    w2t = w2t.at[out_dim:, hidden:].set(wt2.T)                # [2*out_dim, 2H]
    b2t = jnp.concatenate([bs2, bt2], axis=1).T               # [2*out_dim, 1]
    return w1t, b1t, w2t, b2t


def _pick_batch_tile(B, block_b):
    """Lane-axis (batch) tile: multiple of 128, >= 2 grid steps when possible (v7x)."""
    if B <= 256:
        return B                                  # single block == full lane extent
    half = (B // 2 // 128) * 128                  # aim for at least 2 grid steps
    return max(128, min(block_b, half))


@functools.partial(jax.jit, static_argnames=("block_b",))
def coupling_forward(x, params, *, block_b=8192):
    """x: [B, in_dim + out_dim] f32.  Returns (y [B, D], log_det [B])."""
    B, D = x.shape
    w1t, b1t, w2t, b2t = _fuse_params(params)

    # Feature-major layout so batch rides the 128-lane axis (layout plumbing only).
    xT = x.T                                                  # [D, B]

    tb = _pick_batch_tile(B, block_b)
    grid = (pl.cdiv(B, tb),)  # ragged last block: math is per-column, OOB writes dropped

    kernel = functools.partial(coupling_kernel, in_dim=IN_DIM, out_dim=OUT_DIM)
    resident = lambda a: pl.BlockSpec(a.shape, lambda i: (0, 0))  # stays in VMEM

    # TODO(synk): if this layer is used inside a multi-layer flow, fuse several
    # coupling layers into one pallas_call (stack weights [L, ...], fori_loop over
    # layers per tile, alternating the pass-through half) so intermediate y never
    # leaves VMEM; only a single layer is specified by this module.
    yT, logdet = pl.pallas_call(
        kernel,
        out_shape=(jax.ShapeDtypeStruct((D, B), x.dtype),
                   jax.ShapeDtypeStruct((1, B), jnp.float32)),
        grid_spec=pltpu.PrefetchScalarGridSpec(
            num_scalar_prefetch=0,
            grid=grid,
            in_specs=[
                pl.BlockSpec((D, tb), lambda i: (0, i)),      # x: streamed per tile
                resident(w1t), resident(b1t),                 # fused weights: resident
                resident(w2t), resident(b2t),
            ],
            out_specs=(
                pl.BlockSpec((D, tb), lambda i: (0, i)),
                pl.BlockSpec((1, tb), lambda i: (0, i)),      # lane-dense log_det
            ),
        ),
        compiler_params=pltpu.CompilerParams(
            dimension_semantics=("parallel",),   # shards batch tiles across TCs (v7x)
            vmem_limit_bytes=32 * 1024 * 1024,   # fits v5e/v6e/v7x scoped budgets
        ),
    )(xT, w1t, b1t, w2t, b2t)

    return yT.T, logdet[0]


def init_params_module_default(key):
    """Matches the PyTorch __init__: scale_net zeroed, translate_net random."""
    k1, k2 = jax.random.split(key)
    ws1 = jnp.zeros((IN_DIM, HIDDEN), jnp.float32)
    bs1 = jnp.zeros((1, HIDDEN), jnp.float32)
    ws2 = jnp.zeros((HIDDEN, OUT_DIM), jnp.float32)
    bs2 = jnp.zeros((1, OUT_DIM), jnp.float32)
    wt1 = 0.1 * jax.random.normal(k1, (IN_DIM, HIDDEN), jnp.float32)
    bt1 = jnp.zeros((1, HIDDEN), jnp.float32)
    wt2 = 0.1 * jax.random.normal(k2, (HIDDEN, OUT_DIM), jnp.float32)
    bt2 = jnp.zeros((1, OUT_DIM), jnp.float32)
    return (ws1, bs1, ws2, bs2, wt1, bt1, wt2, bt2)


def init_params_nonzero(key):
    """Nonzero scale_net params so the tanh/exp/log_det path is exercised."""
    ks = jax.random.split(key, 8)
    nrm = lambda k, shape: 0.1 * jax.random.normal(k, shape, jnp.float32)
    ws1 = nrm(ks[0], (IN_DIM, HIDDEN)); bs1 = nrm(ks[1], (1, HIDDEN))
    ws2 = nrm(ks[2], (HIDDEN, OUT_DIM)); bs2 = nrm(ks[3], (1, OUT_DIM))
    wt1 = nrm(ks[4], (IN_DIM, HIDDEN)); bt1 = nrm(ks[5], (1, HIDDEN))
    wt2 = nrm(ks[6], (HIDDEN, OUT_DIM)); bt2 = nrm(ks[7], (1, OUT_DIM))
    return (ws1, bs1, ws2, bs2, wt1, bt1, wt2, bt2)


def reference_forward(x, params):
    ws1, bs1, ws2, bs2, wt1, bt1, wt2, bt2 = params
    x1, x2 = x[:, :IN_DIM], x[:, IN_DIM:]

    def mlp(z, w1, b1, w2, b2):
        h = z @ w1 + b1
        h = h * jax.nn.sigmoid(h)
        return h @ w2 + b2

    s = jnp.tanh(mlp(x1, ws1, bs1, ws2, bs2))
    t = mlp(x1, wt1, bt1, wt2, bt2)
    y2 = x2 * jnp.exp(s) + t
    return jnp.concatenate([x1, y2], axis=1), s.sum(axis=1)


def _check(x, params, block_b):
    y, log_det = coupling_forward(x, params, block_b=block_b)
    jax.block_until_ready((y, log_det))
    y_ref, ld_ref = reference_forward(x, params)
    assert y.shape == x.shape
    assert log_det.shape == (x.shape[0],)
    assert jnp.allclose(y, y_ref, atol=1e-5, rtol=1e-5)
    assert jnp.allclose(log_det, ld_ref, atol=1e-5, rtol=1e-5)


if __name__ == "__main__":
    key = jax.random.PRNGKey(0)
    kx, kx2, kp1, kp2 = jax.random.split(key, 4)
    x_small = jax.random.normal(kx, (BATCH, IN_DIM + OUT_DIM), jnp.float32)
    # Non-divisible batch with a forced small tile: exercises multi-tile grid,
    # the ragged final block, and the "parallel" sharding path.
    x_ragged = jax.random.normal(kx2, (300, IN_DIM + OUT_DIM), jnp.float32)

    params_default = init_params_module_default(kp1)   # zeroed scale_net (as in PyTorch init)
    params_nonzero = init_params_nonzero(kp2)           # nonzero scale_net path

    for params in (params_default, params_nonzero):
        _check(x_small, params, block_b=8192)   # single block, full lane extent
        _check(x_ragged, params, block_b=128)   # 3 tiles, last one ragged (44 lanes)

    print("KERNEL_OK")
</pallas_src>

<mosaic_0001>
module attributes {stable_mosaic.version = 11 : i64} {
  func.func @coupling_kernel(%arg0: i32, %arg1: memref<8x8xf32, #tpu.memory_space<vmem>>, %arg2: memref<64x4xf32, #tpu.memory_space<vmem>>, %arg3: memref<64x1xf32, #tpu.memory_space<vmem>>, %arg4: memref<8x64xf32, #tpu.memory_space<vmem>>, %arg5: memref<8x1xf32, #tpu.memory_space<vmem>>, %arg6: memref<8x8xf32, #tpu.memory_space<vmem>>, %arg7: memref<1x8xf32, #tpu.memory_space<vmem>>) attributes {dimension_semantics = [#tpu.dimension_semantics<parallel>], iteration_bounds = array<i64: 1>, scalar_prefetch = 0 : i64, scratch_operands = 0 : i64, tpu.core_type = #tpu.core_type<tc>, window_params = [{transform_indices = @transform_0, window_bounds = array<i64: 8, 8>}, {pipeline_mode = #tpu.pipeline_mode<synchronous>, transform_indices = @transform_1, window_bounds = array<i64: 64, 4>}, {pipeline_mode = #tpu.pipeline_mode<synchronous>, transform_indices = @transform_2, window_bounds = array<i64: 64, 1>}, {pipeline_mode = #tpu.pipeline_mode<synchronous>, transform_indices = @transform_3, window_bounds = array<i64: 8, 64>}, {pipeline_mode = #tpu.pipeline_mode<synchronous>, transform_indices = @transform_4, window_bounds = array<i64: 8, 1>}, {transform_indices = @transform_5, window_bounds = array<i64: 8, 8>}, {transform_indices = @transform_6, window_bounds = array<i64: 1, 8>}]} {
    %c0 = arith.constant 0 : index
    %c0_0 = arith.constant 0 : index
    %0 = vector.load %arg1[%c0, %c0_0] : memref<8x8xf32, #tpu.memory_space<vmem>>, vector<8x8xf32>
    %1 = vector.extract_strided_slice %0 {offsets = [0, 0], sizes = [4, 8], strides = [1, 1]} : vector<8x8xf32> to vector<4x8xf32>
    %2 = vector.extract_strided_slice %0 {offsets = [4, 0], sizes = [4, 8], strides = [1, 1]} : vector<8x8xf32> to vector<4x8xf32>
    %c0_1 = arith.constant 0 : index
    %c0_2 = arith.constant 0 : index
    %3 = vector.load %arg2[%c0_1, %c0_2] : memref<64x4xf32, #tpu.memory_space<vmem>>, vector<64x4xf32>
    %cst = arith.constant dense<0.000000e+00> : vector<64x8xf32>
    %4 = tpu.matmul %3, %1, %cst {dimension_numbers = #tpu.dot_dimension_numbers<[1], [0], [0], [1], [0, 0, 1, 1], [], []>} : vector<64x4xf32>, vector<4x8xf32>, vector<64x8xf32> -> vector<64x8xf32>
    %c0_3 = arith.constant 0 : index
    %c0_4 = arith.constant 0 : index
    %5 = vector.load %arg3[%c0_3, %c0_4] : memref<64x1xf32, #tpu.memory_space<vmem>>, vector<64x1xf32>
    %6 = vector.broadcast %5 : vector<64x1xf32> to vector<64x8xf32>
    %7 = arith.addf %4, %6 : vector<64x8xf32>
    %8 = arith.negf %7 : vector<64x8xf32>
    %9 = math.exp %8 : vector<64x8xf32>
    %cst_5 = arith.constant 1.000000e+00 : f32
    %10 = vector.broadcast %cst_5 : f32 to vector<64x8xf32>
    %11 = arith.addf %10, %9 : vector<64x8xf32>
    %12 = arith.divf %10, %11 : vector<64x8xf32>
    %13 = arith.mulf %7, %12 : vector<64x8xf32>
    %c0_6 = arith.constant 0 : index
    %c0_7 = arith.constant 0 : index
    %14 = vector.load %arg4[%c0_6, %c0_7] : memref<8x64xf32, #tpu.memory_space<vmem>>, vector<8x64xf32>
    %cst_8 = arith.constant dense<0.000000e+00> : vector<8x8xf32>
    %15 = tpu.matmul %14, %13, %cst_8 {dimension_numbers = #tpu.dot_dimension_numbers<[1], [0], [0], [1], [0, 0, 1, 1], [], []>} : vector<8x64xf32>, vector<64x8xf32>, vector<8x8xf32> -> vector<8x8xf32>
    %c0_9 = arith.constant 0 : index
    %c0_10 = arith.constant 0 : index
    %16 = vector.load %arg5[%c0_9, %c0_10] : memref<8x1xf32, #tpu.memory_space<vmem>>, vector<8x1xf32>
    %17 = vector.broadcast %16 : vector<8x1xf32> to vector<8x8xf32>
    %18 = arith.addf %15, %17 : vector<8x8xf32>
    %19 = vector.extract_strided_slice %18 {offsets = [0, 0], sizes = [4, 8], strides = [1, 1]} : vector<8x8xf32> to vector<4x8xf32>
    %20 = math.tanh %19 : vector<4x8xf32>
    %21 = vector.extract_strided_slice %18 {offsets = [4, 0], sizes = [4, 8], strides = [1, 1]} : vector<8x8xf32> to vector<4x8xf32>
    %22 = math.exp %20 : vector<4x8xf32>
    %23 = arith.mulf %2, %22 : vector<4x8xf32>
    %24 = arith.addf %23, %21 : vector<4x8xf32>
    %c0_11 = arith.constant 0 : index
    %c0_12 = arith.constant 0 : index
    %25 = vector.load %arg6[%c0_11, %c0_12] : memref<8x8xf32, #tpu.memory_space<vmem>>, vector<4x8xf32>
    tpu.vector_store %arg6[%c0_11, %c0_12], %1 {strides = array<i32>} : memref<8x8xf32, #tpu.memory_space<vmem>>, vector<4x8xf32>,
    %c4 = arith.constant 4 : index
    %c0_13 = arith.constant 0 : index
    %26 = vector.load %arg6[%c4, %c0_13] : memref<8x8xf32, #tpu.memory_space<vmem>>, vector<4x8xf32>
    tpu.vector_store %arg6[%c4, %c0_13], %24 {strides = array<i32>} : memref<8x8xf32, #tpu.memory_space<vmem>>, vector<4x8xf32>,
    %cst_14 = arith.constant dense<0.000000e+00> : vector<8xf32>
    %27 = vector.multi_reduction <add>, %20, %cst_14 [0] : vector<4x8xf32> to vector<8xf32>
    %28 = vector.shape_cast %27 : vector<8xf32> to vector<1x8xf32>
    %c0_15 = arith.constant 0 : index
    %c0_16 = arith.constant 0 : index
    %29 = vector.load %arg7[%c0_15, %c0_16] : memref<1x8xf32, #tpu.memory_space<vmem>>, vector<1x8xf32>
    tpu.vector_store %arg7[%c0_15, %c0_16], %28 {strides = array<i32>} : memref<1x8xf32, #tpu.memory_space<vmem>>, vector<1x8xf32>,
    return
  }
  func.func @transform_0(%arg0: i32) -> (i32, i32) {
    %c0_i32 = arith.constant 0 : i32
    %c0_i32_0 = arith.constant 0 : i32
    return %c0_i32, %arg0 : i32, i32
  }
  func.func @transform_1(%arg0: i32) -> (i32, i32) {
    %c0_i32 = arith.constant 0 : i32
    %c0_i32_0 = arith.constant 0 : i32
    %c0_i32_1 = arith.constant 0 : i32
    return %c0_i32, %c0_i32_0 : i32, i32
  }
  func.func @transform_2(%arg0: i32) -> (i32, i32) {
    %c0_i32 = arith.constant 0 : i32
    %c0_i32_0 = arith.constant 0 : i32
    %c0_i32_1 = arith.constant 0 : i32
    return %c0_i32, %c0_i32_0 : i32, i32
  }
  func.func @transform_3(%arg0: i32) -> (i32, i32) {
    %c0_i32 = arith.constant 0 : i32
    %c0_i32_0 = arith.constant 0 : i32
    %c0_i32_1 = arith.constant 0 : i32
    return %c0_i32, %c0_i32_0 : i32, i32
  }
  func.func @transform_4(%arg0: i32) -> (i32, i32) {
    %c0_i32 = arith.constant 0 : i32
    %c0_i32_0 = arith.constant 0 : i32
    %c0_i32_1 = arith.constant 0 : i32
    return %c0_i32, %c0_i32_0 : i32, i32
  }
  func.func @transform_5(%arg0: i32) -> (i32, i32) {
    %c0_i32 = arith.constant 0 : i32
    %c0_i32_0 = arith.constant 0 : i32
    return %c0_i32, %arg0 : i32, i32
  }
  func.func @transform_6(%arg0: i32) -> (i32, i32) {
    %c0_i32 = arith.constant 0 : i32
    %c0_i32_0 = arith.constant 0 : i32
    return %c0_i32, %arg0 : i32, i32
  }
}

</mosaic_0001>

<bundles_post_ra>
// kernel: coupling_forward.1
= control target key start
LH: loop header
LB: loop body
LE: loop exit
PB: predicated region body
PF: predicated region fallthrough
CT: control target
= control target key end

     0   :  { %vm105_vm0 = vcmask 1043456   ;;  %vm359_vm1 = vcmask 60416   ;;  %vm80_vm2 = vcmask 31744   ;;  %v538_v4 = vmov 0   ;;  %s673_s0 = inlined_call_operand.vmem [shape: f32[8,8], index: 0, kind: input, shape index: {}]   ;;  %s674_s1 = inlined_call_operand.vmem [shape: f32[64,4], index: 1, kind: input, shape index: {}]   ;;  %s675_s2 = inlined_call_operand.vmem [shape: f32[64,1], index: 2, kind: input, shape index: {}]   ;;  %s676_s3 = inlined_call_operand.vmem [shape: f32[8,64], index: 3, kind: input, shape index: {}]   ;;  %s677_s4 = inlined_call_operand.vmem [shape: f32[8,1], index: 4, kind: input, shape index: {}]   ;;  %s678_s5 = inlined_call_operand.vmem [shape: f32[8,8], index: 5, kind: output, shape index: {0}]   ;;  %s679_s6 = inlined_call_operand.hbm [shape: f32[1,8], index: 6, kind: output, shape index: {1}]  }
   0x1   :  { %v581_v0 = vld [vmem:[%s673_s0] sm:$0xff]  ;;  %v25_v2 = vld [vmem:[%s674_s1 + $0x8] sm:$0xff]  ;;  %v26_v3 = vld [vmem:[%s674_s1 + $0x10] sm:$0xff]  ;;  %476 = vset.pattern.permute.xlu0 %v538_v4  ;;  %477 = vset.pattern.permute.xlu1 %v538_v4 }
   0x2   :  { %v24_v1 = vld [vmem:[%s674_s1] sm:$0xff]  ;;  %426 = vmatprep.subr.msk.mxu0 %vm105_vm0, %v581_v0  ;;  %360 = vst.msk [vmem:[%s678_s5] sm:$0xf] %vm359_vm1, %v581_v0  ;;  %v34_v6 = vld [vmem:[%s675_s2 + $0x10] sm:$0xff]  ;;  %v27_v7 = vld [vmem:[%s674_s1 + $0x18] sm:$0xff] }
   0x3   :  { %428 = vmatprep.mubr.msk.f32.mxu0 %vm80_vm2, %v24_v1  ;;  %427 = vmatpush3.msk.msra.mxu0 %vm105_vm0, %v581_v0  ;;  %v32_v5 = vld [vmem:[%s675_s2] sm:$0xff]  ;;  %v33_v9 = vld [vmem:[%s675_s2 + $0x8] sm:$0xff]  ;;  %v35_v10 = vld [vmem:[%s675_s2 + $0x18] sm:$0xff] }
   0x4   :  { %429 = vmatmul.mubr.msk.f32.vlgmr.msra.gmra.mrb[0].mxu0 %vm80_vm2, %v25_v2  ;;  %42 = vperm.xlu0 %476, %v32_v5   ;;  %v28_v8 = vld [vmem:[%s674_s1 + $0x20] sm:$0xff] }
   0x5   :  { %431 = vmatprep.mubr.msk.f32.mxu0 %vm80_vm2, %v26_v3  ;;  %52 = vperm.xlu1 %477, %v34_v6  }
   0x6   :  { %12 = vsyncpa [#allocation3], 0  ;;  %v29_v11 = vld [vmem:[%s674_s1 + $0x28] sm:$0xff]  ;;  %v30_v12 = vld [vmem:[%s674_s1 + $0x30] sm:$0xff]  ;;  %v539_v19 = vmov 0.0|0.0   ;;  %vm540_vm3 = vmmov 0  }
   0x7   :  { %v36_v13 = vld [vmem:[%s675_s2 + $0x20] sm:$0xff]  ;;  %v37_v14 = vld [vmem:[%s675_s2 + $0x28] sm:$0xff]  ;;  %v31_v15 = vld [vmem:[%s674_s1 + $0x38] sm:$0xff]  ;;  %459 = vmatprep.subr.bf16.mxu1 %v539_v19  ;;  %v541_v20 = vmov 0.0   ;;  %vm277_vm4 = vcmask 523264   ;;  %vm370_vm5 = vcmask 57344  }
   0x8   :  { %432 = vmatmul.mubr.msk.f32.gmra.mrb[2].mxu0 %vm80_vm2, %v27_v7  ;;  %47 = vperm.xlu0 %476, %v33_v9   ;;  %v38_v16 = vld [vmem:[%s675_s2 + $0x30] sm:$0xff]  ;;  %v39_v17 = vld [vmem:[%s675_s2 + $0x38] sm:$0xff]  ;;  %v271_v18 = vld [vmem:[%s677_s4] sm:$0xff]  ;;  %s542_s4 = smov [#allocation2]  }
   0x9   :  { %434 = vmatprep.mubr.msk.f32.mxu0 %vm80_vm2, %v28_v8  ;;  %57 = vperm.xlu1 %477, %v35_v10   ;;  %s380_s9 = sshll.u32 %s542_s4, 4  ;;  %s381_s9 = int_to_ptr.vmem [resolvable:$true] %s380_s9 }
   0xa   :  { %456 = vmatprep.mubr.msk.f32.mxu1 %vm540_vm3, %v541_v20  ;;  %s518_s10 = scalar_lea.vmem %s381_s9, 32  ;;  %p519_p1 = scmp.lt.s32.totalorder %s381_s9, %s381_s9 }
   0xc   :  { %435 = vmatmul.mubr.msk.f32.gmra.mrb[4].mxu0 %vm80_vm2, %v29_v11  ;;  %62 = vperm.xlu0 %476, %v36_v13  }
   0xd   :  { %437 = vmatprep.mubr.msk.f32.mxu0 %vm80_vm2, %v30_v12  ;;  %67 = vperm.xlu1 %477, %v37_v14  }
  0x10   :  { %438 = vmatmul.mubr.msk.f32.gmra.mrb[6].mxu0 %vm80_vm2, %v31_v15  ;;  %72 = vperm.xlu0 %476, %v38_v16  }
  0x11   :  { %77 = vperm.xlu1 %477, %v39_v17  }
  0x14   :  { %274 = vperm.xlu0 %476, %v271_v18  }
  0x83   :  { %v43_v21 = vpop.permute.xlu0 %42 }
  0x84   :  { %v53_v22 = vpop.permute.xlu1 %52 }
  0x87   :  { %v48_v23 = vpop.permute.xlu0 %47 }
  0x88   :  { %v58_v24 = vpop.permute.xlu1 %57 }
  0x8b   :  { %v63_v36 = vpop.permute.xlu0 %62 }
  0x8c   :  { %v68_v34 = vpop.permute.xlu1 %67 }
  0x8f   :  { %v73_v47 = vpop.permute.xlu0 %72 }
  0x90   :  { %v78_v44 = vpop.permute.xlu1 %77 }
  0xd7   :  { %v430_v25 = vpop.f32.mrb[0].mxu0 }
  0xd8   :  { %v181_v26 = vadd.f32 %v430_v25, %v48_v23  ;;  %v175_v27 = vpop.f32.mrb[1].mxu0 }
  0xd9   :  { %v176_v28 = vadd.f32 %v175_v27, %v43_v21  ;;  %v270_v27 = vld [vmem:[%s676_s3] sm:$0xff]  ;;  %s514_s3 = scalar_lea.vmem %s381_s9, 16 }
  0xda   :  { %v400_v29 = vmul.f32 -1.442695, %v181_v26  ;;  %p515_p0 = scmp.ne.s32.totalorder %s381_s9, %s514_s3  ;;  %p520_p2 = scmp.lt.s32.totalorder %s518_s10, %s514_s3 }
  0xdb   :  { %v399_v30 = vmul.f32 -1.442695, %v176_v28  ;;  %v433_v31 = vpop.f32.mrb[2].mxu0 }
  0xdc   :  { %478 = vpow2.f32 %v400_v29  ;;  %v191_v32 = vadd.f32 %v433_v31, %v58_v24  ;;  %v185_v33 = vpop.f32.mrb[3].mxu0  ;;  %p521_p3 = por %p520_p2, %p519_p1 }
  0xdd   :  { %480 = vpow2.f32 %v399_v30  ;;  %v186_v35 = vadd.f32 %v185_v33, %v53_v22 }
  0xde   :  { %v402_v37 = vmul.f32 -1.442695, %v191_v32  ;;  %p522_p4 = pnand %p521_p3, %p515_p0 }
  0xdf   :  { %v401_v38 = vmul.f32 -1.442695, %v186_v35  ;;  %v436_v39 = vpop.f32.mrb[4].mxu0 }
  0xe0   :  { %482 = vpow2.f32 %v402_v37  ;;  %v201_v40 = vadd.f32 %v436_v39, %v68_v34  ;;  %v195_v41 = vpop.f32.mrb[5].mxu0 }
  0xe1   :  { %484 = vpow2.f32 %v401_v38  ;;  %v196_v42 = vadd.f32 %v195_v41, %v63_v36 }
  0xe2   :  { %v404_v43 = vmul.f32 -1.442695, %v201_v40 }
  0xe3   :  { %v403_v45 = vmul.f32 -1.442695, %v196_v42  ;;  %v439_v46 = vpop.f32.mrb[6].mxu0 }
  0xe4   :  { %486 = vpow2.f32 %v404_v43  ;;  %v211_v48 = vadd.f32 %v439_v46, %v78_v44  ;;  %v205_v49 = vpop.f32.mrb[7].mxu0 }
  0xe5   :  { %488 = vpow2.f32 %v403_v45  ;;  %v206_v50 = vadd.f32 %v205_v49, %v73_v47 }
  0xe6   :  { %v479_v51 = vpop.eup %478  ;;  %v406_v52 = vmul.f32 -1.442695, %v211_v48 }
  0xe7   :  { %v481_v53 = vpop.eup %480  ;;  %v239_v54 = vadd.f32 1.0, %v479_v51  ;;  %v405_v55 = vmul.f32 -1.442695, %v206_v50 }
  0xe8   :  { %v238_v56 = vadd.f32 1.0, %v481_v53  ;;  %490 = vpow2.f32 %v406_v52 }
  0xe9   :  { %492 = vrcp.f32 %v239_v54 }
  0xea   :  { %v483_v57 = vpop.eup %482  ;;  %494 = vrcp.f32 %v238_v56 }
  0xeb   :  { %v485_v58 = vpop.eup %484  ;;  %v241_v59 = vadd.f32 1.0, %v483_v57  ;;  %496 = vpow2.f32 %v405_v55 }
  0xec   :  { %v240_v60 = vadd.f32 1.0, %v485_v58 }
  0xed   :  { %498 = vrcp.f32 %v241_v59 }
  0xee   :  { %v487_v61 = vpop.eup %486  ;;  %500 = vrcp.f32 %v240_v60 }
  0xef   :  { %v489_v62 = vpop.eup %488  ;;  %v243_v63 = vadd.f32 1.0, %v487_v61 }
  0xf0   :  { %v242_v1 = vadd.f32 1.0, %v489_v62 }
  0xf1   :  { %502 = vrcp.f32 %v243_v63 }
  0xf2   :  { %v491_v2 = vpop.eup %490  ;;  %504 = vrcp.f32 %v242_v1 }
  0xf3   :  { %v493_v3 = vpop.eup %492  ;;  %v245_v4 = vadd.f32 1.0, %v491_v2 }
  0xf4   :  { %v495_v5 = vpop.eup %494  ;;  %v263_v6 = vmul.f32 %v493_v3, %v181_v26 }
  0xf5   :  { %v497_v7 = vpop.eup %496  ;;  %v262_v8 = vmul.f32 %v495_v5, %v176_v28  ;;  %506 = vrcp.f32 %v245_v4  ;;  %v275_v28 = vpop.permute.xlu0 %274 }
  0xf6   :  { %v244_v9 = vadd.f32 1.0, %v497_v7 }
  0xf7   :  { %v499_v10 = vpop.eup %498  ;;  %v460_v11 = vpack.c.bf16 %v263_v6, %v262_v8 }
  0xf8   :  { %v501_v12 = vpop.eup %500  ;;  %v265_v13 = vmul.f32 %v499_v10, %v191_v32  ;;  %508 = vrcp.f32 %v244_v9 }
  0xf9   :  { %v264_v14 = vmul.f32 %v501_v12, %v186_v35  ;;  %461 = vmatpush3.bf16.msra.mxu1 %v460_v11 }
  0xfa   :  { %462 = vmatprep.subr.bf16.mxu1 %v539_v19 }
  0xfb   :  { %v503_v15 = vpop.eup %502  ;;  %v463_v16 = vpack.c.bf16 %v265_v13, %v264_v14 }
  0xfc   :  { %v505_v17 = vpop.eup %504  ;;  %v267_v18 = vmul.f32 %v503_v15, %v201_v40 }
  0xfd   :  { %v266_v20 = vmul.f32 %v505_v17, %v196_v42  ;;  %464 = vmatpush3.bf16.msra.mxu1 %v463_v16 }
  0xfe   :  { %465 = vmatprep.subr.bf16.mxu1 %v539_v19 }
  0xff   :  { %v507_v21 = vpop.eup %506  ;;  %v466_v22 = vpack.c.bf16 %v267_v18, %v266_v20 }
 0x100   :  { %v269_v23 = vmul.f32 %v507_v21, %v211_v48 }
 0x101   :  { %467 = vmatpush3.bf16.msra.mxu1 %v466_v22 }
 0x102   :  { %v509_v24 = vpop.eup %508  ;;  %468 = vmatprep.subr.bf16.mxu1 %v539_v19 }
 0x103   :  { %v268_v25 = vmul.f32 %v509_v24, %v206_v50 }
 0x105   :  { %v469_v26 = vpack.c.bf16 %v269_v23, %v268_v25 }
 0x107   :  { %470 = vmatpush3.bf16.msra.mxu1 %v469_v26 }
 0x10a   :  { %457 = vmatmul.mubr.msk.f32.vlgmr.msra.gmra.mrb[0].mxu1 %vm277_vm4, %v270_v27 }
 0x1dd   :  { %v347_v29 = vpop.f32.mrb[0].mxu1 }
 0x1de   :  { %v348_v30 = vadd.f32 %v347_v29, %v275_v28  ;;  %v458_v31 = vpop.f32.mrb[1].mxu1 }
 0x1e0   :  { %510 = vtanh.f32 %v348_v30 }
 0x1ea   :  { %v511_v32 = vpop.eup %510 }
 0x1eb   :  { %v352_v33 = vmul.f32 1.442695, %v511_v32  ;;  %v363_v34 = vsel %vm359_vm1, %v511_v32, 0.0 }
 0x1ec   :  { %v364_v35 = vrot.slane %v363_v34, 4 }
 0x1ed   :  { %512 = vpow2.f32 %v352_v33 }
 0x1ee   :  { %v365_v19 = vadd.f32 %v364_v35, %v363_v34 }
 0x1f0   :  { %v366_v36 = vrot.slane %v365_v19, 2 }
 0x1f2   :  { %v367_v37 = vadd.f32 %v366_v36, %v365_v19 }
 0x1f4   :  { %v368_v38 = vrot.slane %v367_v37, 1 }
 0x1f6   :  { %v369_v39 = vadd.f32 %v368_v38, %v367_v37 }
 0x1f7   :  { %v513_v40 = vpop.eup %512 }
 0x1f8   :  { %v355_v41 = vrot.slane %v513_v40, 4  ;;  %371 = vst.msk [vmem:[#allocation2] sm:$0x1] %vm370_vm5, %v369_v39 }
 0x1f9   :  { %525 = shalt.err (!%p522_p4)
}
 0x1fa   :  { %s526_s13 = scalar_lea.hbm %s679_s6, 16 }
 0x1fb   :  { %p527_p5 = scmp.ne.s32.totalorder %s679_s6, %s526_s13  ;;  %p530_p6 = scmp.lt.u32.totalorder %s526_s13, %s679_s6 }
 0x1fd   :  { %p532_p7 = pnand %p530_p6, %p527_p5 }
 0x1ff   :  { %535 = shalt.err (!%p532_p7)
}
 0x200   :  { %383 = dma.vmem_to_hbm [thread:$0]  %s381_s9, 16, %s679_s6, [#allocation3]   ;;  %v357_v42 = vmul.f32 %v355_v41, %v581_v0  ;;  %vm361_vm6 = vcmask 64516  }
 0x202   :  { %v358_v43 = vadd.f32 %v357_v42, %v348_v30 }
 0x204   :  { %362 = vst.msk [vmem:[%s678_s5] sm:$0xf0] %vm361_vm6, %v358_v43 }
 0x205   :  { %536 = dma.done.wait [#allocation3], 16  }
 0x206   :  { %537 = vsyncadd [#allocation3], 4294967280 }
 0x207   :  { %389 = vsyncpa [#allocation3], 1 }

</bundles_post_ra>
